<compile_context>
chip_gen: v6e
topology: v6e:2x2x1
jax: 0.10.0
libtpu: 0.0.40
codegen_flags: <defaults>
</compile_context>

<pallas_src>
import functools

import jax
import jax.numpy as jnp
from jax.experimental import pallas as pl
from jax.experimental.pallas import tpu as pltpu


def _relu_kernel(x_ref, o_ref):
    # Elementwise clamp(min=0.0) == max(x, 0) on the whole VMEM block (VPU).
    o_ref[...] = jnp.maximum(x_ref[...], jnp.zeros((), x_ref.dtype))


_PACK = 32                       # covers (8|16|32, 128) sublane packing (f32/bf16/int8)
_LANE = 128
_BLOCK_1D_QUANTUM = 8 * _LANE    # 1024-element granularity for the flat 1-D path
_MIN_GRID_STEPS = 4              # keep the pipeline multi-stage / both v7x TCs busy
_MIN_SPLIT_BYTES = 4 * 1024 * 1024


@functools.lru_cache(maxsize=None)
def _chip_config():
    """Returns (target block bytes, vmem limit bytes) tuned per TPU generation."""
    try:
        kind = jax.devices()[0].device_kind.lower()
    except Exception:  # pragma: no cover - defensive default
        kind = ""
    if "v7" in kind:
        # ~3.2 TB/s HBM, only 64 MiB VMEM/TC: 8 MiB blocks (32 MiB double-buffered
        # in+out) drop the ~0.35us per-grid-step overhead to <10%.
        return 8 * 1024 * 1024, 48 * 1024 * 1024
    if "v6" in kind or "trillium" in kind:
        # ~1.4 TB/s: 4 MiB blocks sit at the knee of the measured roofline curve.
        return 4 * 1024 * 1024, 64 * 1024 * 1024
    # v5e & default: 2 MiB blocks already reach the ~85% roofline plateau; the
    # explicit 32 MiB limit is load-bearing (v5e scoped default is 16 MiB).
    return 2 * 1024 * 1024, 32 * 1024 * 1024


def _pick_lane_width(n: int) -> int:
    """Largest lane width in {8192,...,128} dividing n, else 0 (use 1-D path)."""
    for w in (8192, 4096, 2048, 1024, 512, 256, 128):
        if n % w == 0:
            return w
    return 0


def _relu_2d(x_flat, n, w, dtype, itemsize, target_bytes, vmem_limit):
    """Lane-dense (rows, w) path for sizes divisible by 128 (no pad, no slice)."""
    rows = n // w
    row_bytes = w * itemsize
    tile_rows = max(target_bytes // row_bytes, _PACK)
    tile_rows -= tile_rows % _PACK
    if n * itemsize >= _MIN_SPLIT_BYTES:
        # Keep at least _MIN_GRID_STEPS grid steps on big tensors so the DMA
        # pipeline overlaps and v7x can shard the axis over both TensorCores.
        cap = pl.cdiv(rows, _MIN_GRID_STEPS)
        cap = max(_PACK, cap - cap % _PACK)
        tile_rows = min(tile_rows, cap)
    if tile_rows >= rows:
        tile_rows = rows         # single block spanning the full row extent (always legal)

    x2d = x_flat.reshape(rows, w)
    out2d = pl.pallas_call(
        _relu_kernel,
        out_shape=jax.ShapeDtypeStruct((rows, w), dtype),
        grid=(pl.cdiv(rows, tile_rows),),       # ragged last block masked by Pallas
        in_specs=[pl.BlockSpec((tile_rows, w), lambda i: (i, 0))],
        out_specs=pl.BlockSpec((tile_rows, w), lambda i: (i, 0)),
        compiler_params=pltpu.CompilerParams(
            dimension_semantics=("parallel",),  # independent blocks -> v7x TC sharding
            vmem_limit_bytes=vmem_limit,
        ),
    )(x2d)
    return out2d.reshape(-1)


def _relu_1d(x_flat, n, dtype, itemsize, target_bytes, vmem_limit):
    """Flat 1-D path for sizes NOT divisible by 128: zero copies, Pallas masks
    the ragged last block (no jnp.pad / trailing slice)."""
    block = max(target_bytes // itemsize, _BLOCK_1D_QUANTUM)
    block -= block % _BLOCK_1D_QUANTUM
    if n * itemsize >= _MIN_SPLIT_BYTES:
        cap = pl.cdiv(n, _MIN_GRID_STEPS)
        cap = max(_BLOCK_1D_QUANTUM, cap - cap % _BLOCK_1D_QUANTUM)
        block = min(block, cap)
    if block >= n:
        block = n                # block == full extent (legal for any n)

    out_flat = pl.pallas_call(
        _relu_kernel,
        out_shape=jax.ShapeDtypeStruct((n,), dtype),
        grid=(pl.cdiv(n, block),),              # ragged last block masked by Pallas
        in_specs=[pl.BlockSpec((block,), lambda i: (i,))],
        out_specs=pl.BlockSpec((block,), lambda i: (i,)),
        compiler_params=pltpu.CompilerParams(
            dimension_semantics=("parallel",),
            vmem_limit_bytes=vmem_limit,
        ),
    )(x_flat)
    return out_flat


@functools.partial(jax.jit, static_argnames=("block_bytes",))
def relu(x: jax.Array, block_bytes=None) -> jax.Array:
    """Apply ReLU elementwise via a Pallas TPU kernel. Works for any shape/dtype.

    `block_bytes` overrides the per-generation block-size target (used in tests
    to exercise multi-step grids and ragged last blocks at small sizes).
    """
    orig_shape = x.shape
    dtype = x.dtype
    n = x.size
    if n == 0:
        return x

    target_bytes, vmem_limit = _chip_config()
    if block_bytes is not None:
        target_bytes = int(block_bytes)
    itemsize = jnp.dtype(dtype).itemsize

    x_flat = x.reshape(-1)       # contiguous reshape: free, no HBM copy
    w = _pick_lane_width(n)
    if w:
        out_flat = _relu_2d(x_flat, n, w, dtype, itemsize, target_bytes, vmem_limit)
    else:
        out_flat = _relu_1d(x_flat, n, dtype, itemsize, target_bytes, vmem_limit)
    return out_flat.reshape(orig_shape)


if __name__ == "__main__":
    # 1) Small NCHW activation (batch=2, C=4, H=W=16): size % 128 == 0 ->
    #    lane-dense 2-D path, single block.
    x = jax.random.normal(jax.random.PRNGKey(0), (2, 4, 16, 16), dtype=jnp.float32)
    y = jax.block_until_ready(relu(x))
    assert y.shape == x.shape and y.dtype == x.dtype
    assert bool(jnp.allclose(y, jnp.maximum(x, 0.0))), "Pallas ReLU mismatch (f32, 2-D path)"

    # 2) Odd size (105 elements, not a multiple of 128) -> copy-free 1-D path.
    x_odd = jax.random.normal(jax.random.PRNGKey(1), (3, 5, 7), dtype=jnp.float32)
    y_odd = jax.block_until_ready(relu(x_odd))
    assert bool(jnp.allclose(y_odd, jnp.maximum(x_odd, 0.0))), "Pallas ReLU mismatch (odd shape)"

    # 3) Force a tiny block to exercise a multi-step grid with a ragged last
    #    block on the 2-D path (rows=65, 32-row tiles -> grid=3).
    x_2d = jax.random.normal(jax.random.PRNGKey(2), (2, 128, 130), dtype=jnp.float32)
    y_2d = jax.block_until_ready(relu(x_2d, block_bytes=64 * 1024))
    assert bool(jnp.allclose(y_2d, jnp.maximum(x_2d, 0.0))), "Pallas ReLU mismatch (2-D ragged grid)"

    # 4) Multi-step grid with a ragged last block on the 1-D path
    #    (n=10500, 1024-element blocks -> grid=11, last block 260 elements).
    x_1d = jax.random.normal(jax.random.PRNGKey(3), (3, 5, 7, 100), dtype=jnp.float32)
    y_1d = jax.block_until_ready(relu(x_1d, block_bytes=4 * 1024))
    assert bool(jnp.allclose(y_1d, jnp.maximum(x_1d, 0.0))), "Pallas ReLU mismatch (1-D ragged grid)"

    # 5) bf16 dtype check.
    x_bf = jax.random.normal(jax.random.PRNGKey(4), (2, 8, 128), dtype=jnp.bfloat16)
    y_bf = jax.block_until_ready(relu(x_bf))
    assert y_bf.dtype == jnp.bfloat16
    assert bool(jnp.allclose(y_bf, jnp.maximum(x_bf, jnp.bfloat16(0)))), "Pallas ReLU mismatch (bf16)"

    print("KERNEL_OK")
</pallas_src>

<mosaic_0001>
module attributes {stable_mosaic.version = 11 : i64} {
  func.func @_relu_kernel(%arg0: i32, %arg1: memref<1x2048xf32, #tpu.memory_space<vmem>>, %arg2: memref<1x2048xf32, #tpu.memory_space<vmem>>) attributes {dimension_semantics = [#tpu.dimension_semantics<parallel>], iteration_bounds = array<i64: 1>, scalar_prefetch = 0 : i64, scratch_operands = 0 : i64, tpu.core_type = #tpu.core_type<tc>, window_params = [{transform_indices = @transform_0, window_bounds = array<i64: 1, 2048>}, {transform_indices = @transform_1, window_bounds = array<i64: 1, 2048>}]} {
    %c0 = arith.constant 0 : index
    %c0_0 = arith.constant 0 : index
    %0 = vector.load %arg1[%c0, %c0_0] : memref<1x2048xf32, #tpu.memory_space<vmem>>, vector<1x2048xf32>
    %cst = arith.constant 0.000000e+00 : f32
    %1 = vector.broadcast %cst : f32 to vector<1x2048xf32>
    %2 = arith.maximumf %0, %1 : vector<1x2048xf32>
    %c0_1 = arith.constant 0 : index
    %c0_2 = arith.constant 0 : index
    %3 = vector.load %arg2[%c0_1, %c0_2] : memref<1x2048xf32, #tpu.memory_space<vmem>>, vector<1x2048xf32>
    tpu.vector_store %arg2[%c0_1, %c0_2], %2 {strides = array<i32>} : memref<1x2048xf32, #tpu.memory_space<vmem>>, vector<1x2048xf32>,
    return
  }
  func.func @transform_0(%arg0: i32) -> (i32, i32) {
    %c0_i32 = arith.constant 0 : i32
    %c0_i32_0 = arith.constant 0 : i32
    return %arg0, %c0_i32 : i32, i32
  }
  func.func @transform_1(%arg0: i32) -> (i32, i32) {
    %c0_i32 = arith.constant 0 : i32
    %c0_i32_0 = arith.constant 0 : i32
    return %arg0, %c0_i32 : i32, i32
  }
}

</mosaic_0001>

<bundles_post_ra>
// kernel: relu.1
= control target key start
LH: loop header
LB: loop body
LE: loop exit
PB: predicated region body
PF: predicated region fallthrough
CT: control target
= control target key end

     0   :  { %s40_s0 = inlined_call_operand.vmem [shape: f32[1,2048], index: 0, kind: input, shape index: {}]   ;;  %s41_s1 = inlined_call_operand.vmem [shape: f32[1,2048], index: 1, kind: output, shape index: {}]  }
   0x1   :  { %v8_v0 = vld [vmem:[%s40_s0] sm:$0xff]  ;;  %v9_v1 = vld [vmem:[%s40_s0 + $0x8] sm:$0xff] }
   0x2   :  { %v10_v2 = vmax.f32 %v8_v0, 0.0  ;;  %v11_v3 = vmax.f32 %v9_v1, 0.0 }
   0x4   :  { %12 = vst [vmem:[%s41_s1] sm:$0xff] %v10_v2  ;;  %13 = vst [vmem:[%s41_s1 + $0x8] sm:$0xff] %v11_v3 }

</bundles_post_ra>
